<compile_context>
chip_gen: v7x
topology: tpu7x:2x2x1
jax: 0.10.0
libtpu: 0.0.40
codegen_flags: <defaults>
</compile_context>

<pallas_src>
import functools

import jax
import jax.numpy as jnp
from jax.experimental import pallas as pl
from jax.experimental.pallas import tpu as pltpu

_LANE = 128
_TARGET_X_BLOCK_BYTES = 8 * 1024 * 1024   # per x block; double-buffered => ~16 MiB


def _round_up(a, b):
    return (a + b - 1) // b * b


def _mlp_finalize(pooled_sum, pooled_max, w1t_ref, w2t_ref, o_ref, *, hw_true, tile_n):
    """Shared MLP + sigmoid on the pooled statistics (runs once per N tile)."""
    avg = pooled_sum * (1.0 / hw_true)                       # true HW, not padded
    # Run the shared MLP once on [avg; max] stacked (halves MXU pushes).
    stacked = jnp.concatenate([avg, pooled_max], axis=0)     # (2*tile_n, C)
    h = jnp.dot(stacked, w1t_ref[...], preferred_element_type=jnp.float32)   # fc1
    h = jnp.maximum(h, 0.0)                                                  # ReLU
    y = jnp.dot(h, w2t_ref[...], preferred_element_type=jnp.float32)         # fc2
    out = y[:tile_n, :] + y[tile_n:, :]
    o_ref[...] = jax.nn.sigmoid(out).astype(o_ref.dtype)


def _ca_single_chunk_kernel(x_ref, w1t_ref, w2t_ref, o_ref, *, hw_true, tile_n):
    """Fast path: whole HW extent fits one block. Grid = (N tiles [parallel],)."""
    p = x_ref[...].astype(jnp.float32)                 # (tile_n, C, hw)
    pooled_sum = jnp.sum(p, axis=-1)                   # (tile_n, C)
    pooled_max = jnp.max(p, axis=-1)                   # (tile_n, C)
    _mlp_finalize(pooled_sum, pooled_max, w1t_ref, w2t_ref, o_ref,
                  hw_true=hw_true, tile_n=tile_n)


def _ca_streaming_kernel(x_ref, w1t_ref, w2t_ref, o_ref, sum_acc, max_acc,
                         *, hw_true, hw_chunk, tile_n, ragged):
    """Grid = (N tiles [parallel], HW chunks [arbitrary, innermost])."""
    j = pl.program_id(1)
    last = pl.num_programs(1) - 1

    @pl.when(j == 0)
    def _init():
        sum_acc[...] = jnp.zeros(sum_acc.shape, sum_acc.dtype)
        max_acc[...] = jnp.full(max_acc.shape, -jnp.inf, max_acc.dtype)

    def _accumulate(mask_tail):
        # Reduce the whole chunk to (tile_n, C) partials; a single accumulator
        # RMW per grid step keeps the kernel HBM-streaming-bound.
        p = x_ref[...].astype(jnp.float32)             # (tile_n, C, hw_chunk)
        if mask_tail:
            # Partial last block: OOB lanes hold unspecified data, so BOTH the
            # sum and the max must be masked.
            lane = j * hw_chunk + jax.lax.broadcasted_iota(
                jnp.int32, (1, 1, hw_chunk), 2)
            valid = lane < hw_true
            psum = jnp.sum(jnp.where(valid, p, 0.0), axis=-1)
            pmax = jnp.max(jnp.where(valid, p, -jnp.inf), axis=-1)
        else:
            psum = jnp.sum(p, axis=-1)
            pmax = jnp.max(p, axis=-1)
        sum_acc[...] = sum_acc[...] + psum
        max_acc[...] = jnp.maximum(max_acc[...], pmax)

    if ragged:
        @pl.when(j == last)
        def _tail():
            _accumulate(True)

        @pl.when(j < last)
        def _body():
            _accumulate(False)
    else:
        _accumulate(False)

    @pl.when(j == last)
    def _finalize():
        _mlp_finalize(sum_acc[...], max_acc[...], w1t_ref, w2t_ref, o_ref,
                      hw_true=hw_true, tile_n=tile_n)


def prepare_channel_attention_weights(w1, w2, hidden_pad=None):
    """Pad/transpose the 1x1-conv weights once (hoisted out of the hot path).

    w1: (C//16, C) fc1.weight squeezed; w2: (C, C//16) fc2.weight squeezed.
    Zero-padding the tiny hidden dim to a lane multiple is mathematically exact.
    """
    hidden, c = w1.shape
    if hidden_pad is None:
        hidden_pad = _round_up(max(hidden, 1), _LANE)
    w1t = jnp.zeros((c, hidden_pad), jnp.float32).at[:, :hidden].set(
        w1.astype(jnp.float32).T)
    w2t = jnp.zeros((hidden_pad, c), jnp.float32).at[:hidden, :].set(
        w2.astype(jnp.float32).T)
    return w1t, w2t


@functools.partial(jax.jit, static_argnames=("block_bytes",))
def channel_attention(x, w1t, w2t, *, block_bytes=None):
    """x: (N, C, H, W) float32/bf16; w1t: (C, Hpad); w2t: (Hpad, C) -> (N, C, 1, 1)."""
    n, c, h, w = x.shape
    hw = h * w
    hidden_pad = w1t.shape[1]
    itemsize = jnp.dtype(x.dtype).itemsize
    if block_bytes is None:
        block_bytes = _TARGET_X_BLOCK_BYTES

    # N tiling: output blocks are (tile_n, C) -> tile_n must be full N or a
    # multiple of 8 (sublane rule). Partial last N tile is fine (garbage rows
    # stay in their own rows and are never written back).
    tile_n = n if n <= 8 else 8
    n_tiles = -(-n // tile_n)

    # HW chunk: largest 128-lane multiple keeping one x block within budget.
    lane_bytes = tile_n * c * itemsize
    budget_lanes = max(_LANE, (block_bytes // lane_bytes) // _LANE * _LANE)

    x_flat = x.reshape(n, c, hw)          # metadata-only reshape; no HBM copy

    w_bytes = 4 * (w1t.size + w2t.size)
    out_bytes = tile_n * c * 4

    if hw <= budget_lanes:
        # Fast path: the whole HW extent fits one block; no scratch, no
        # accumulator pass, last block dim equals the full array dim.
        hw_chunk = hw
        grid = (n_tiles,)
        kernel = functools.partial(_ca_single_chunk_kernel,
                                   hw_true=hw, tile_n=tile_n)
        in_specs = [
            pl.BlockSpec((tile_n, c, hw), lambda i: (i, 0, 0)),
            pl.BlockSpec((c, hidden_pad), lambda i: (0, 0)),
            pl.BlockSpec((hidden_pad, c), lambda i: (0, 0)),
        ]
        out_specs = pl.BlockSpec((tile_n, c), lambda i: (i, 0))
        scratch_shapes = []
        dim_sem = ("parallel",)
        scratch_bytes = 0
    else:
        hw_chunk = budget_lanes
        num_chunks = -(-hw // hw_chunk)
        ragged = (hw % hw_chunk) != 0
        grid = (n_tiles, num_chunks)
        kernel = functools.partial(_ca_streaming_kernel, hw_true=hw,
                                   hw_chunk=hw_chunk, tile_n=tile_n, ragged=ragged)
        in_specs = [
            pl.BlockSpec((tile_n, c, hw_chunk), lambda i, j: (i, 0, j)),
            pl.BlockSpec((c, hidden_pad), lambda i, j: (0, 0)),
            pl.BlockSpec((hidden_pad, c), lambda i, j: (0, 0)),
        ]
        out_specs = pl.BlockSpec((tile_n, c), lambda i, j: (i, 0))
        scratch_shapes = [
            pltpu.VMEM((tile_n, c), jnp.float32),   # running sum
            pltpu.VMEM((tile_n, c), jnp.float32),   # running max
        ]
        dim_sem = ("parallel", "arbitrary")
        scratch_bytes = 2 * tile_n * c * 4

    # Explicit scoped-VMEM limit from the actual footprint (blocks are
    # double-buffered) so large-C shapes don't trip v5e's 16 MiB default.
    x_block_bytes = tile_n * c * hw_chunk * itemsize
    vmem_limit = 2 * x_block_bytes + 2 * w_bytes + scratch_bytes + 2 * out_bytes
    vmem_limit = int(min(max(vmem_limit + (8 << 20), 16 << 20), 64 << 20))

    cost = pl.CostEstimate(
        flops=3 * n * c * hw + 8 * n * c * hidden_pad,
        transcendentals=n * c,
        bytes_accessed=n * c * hw * itemsize + n * c * 4 + w_bytes)

    out = pl.pallas_call(
        kernel,
        out_shape=jax.ShapeDtypeStruct((n, c), jnp.float32),
        grid_spec=pltpu.PrefetchScalarGridSpec(
            num_scalar_prefetch=0,
            grid=grid,
            in_specs=in_specs,
            out_specs=out_specs,
            scratch_shapes=scratch_shapes),
        compiler_params=pltpu.CompilerParams(
            dimension_semantics=dim_sem,
            vmem_limit_bytes=vmem_limit),
        cost_estimate=cost,
    )(x_flat, w1t, w2t)

    return out.reshape(n, c, 1, 1).astype(x.dtype)


def channel_attention_reference(x, w1, w2):
    """Pure-JAX reference mirroring the PyTorch forward."""
    xf = x.astype(jnp.float32)
    avg = jnp.mean(xf, axis=(2, 3))                    # (N, C)
    mx = jnp.max(xf, axis=(2, 3))                      # (N, C)

    def mlp(p):
        return jnp.maximum(p @ w1.astype(jnp.float32).T, 0.0) @ w2.astype(jnp.float32).T

    return jax.nn.sigmoid(mlp(avg) + mlp(mx))[:, :, None, None].astype(x.dtype)


if __name__ == "__main__":
    # in_planes must be >= 16 since the module hard-codes in_planes // 16.
    N, C, H, W = 2, 32, 16, 16
    hidden = C // 16

    key = jax.random.PRNGKey(0)
    kx, k1, k2, kx2 = jax.random.split(key, 4)
    x = jax.random.normal(kx, (N, C, H, W), dtype=jnp.float32)
    # 1x1-conv weights squeezed to (out_ch, in_ch).
    w1 = jax.random.normal(k1, (hidden, C), dtype=jnp.float32) * 0.1   # fc1.weight
    w2 = jax.random.normal(k2, (C, hidden), dtype=jnp.float32) * 0.1   # fc2.weight

    w1t, w2t = prepare_channel_attention_weights(w1, w2)   # hoisted, done once

    # 1) Fast path (whole HW fits one block).
    out = jax.block_until_ready(channel_attention(x, w1t, w2t))
    ref = channel_attention_reference(x, w1, w2)
    assert out.shape == (N, C, 1, 1), out.shape
    assert jnp.allclose(out, ref, atol=1e-5, rtol=1e-5), "fast-path mismatch vs reference"

    # 2) Streaming path with a ragged, in-kernel-masked last chunk
    #    (hw = 225 -> one full 128-lane chunk + a 97-lane tail; no host padding).
    N2, H2, W2 = 3, 15, 15
    x2 = jax.random.normal(kx2, (N2, C, H2, W2), dtype=jnp.float32)
    small_block = N2 * C * 4 * _LANE       # force hw_chunk = 128 lanes
    out2 = jax.block_until_ready(channel_attention(x2, w1t, w2t, block_bytes=small_block))
    ref2 = channel_attention_reference(x2, w1, w2)
    assert out2.shape == (N2, C, 1, 1), out2.shape
    assert jnp.allclose(out2, ref2, atol=1e-5, rtol=1e-5), "streaming-path mismatch vs reference"

    print("KERNEL_OK")
</pallas_src>

<mosaic_0001>
module attributes {stable_mosaic.version = 11 : i64} {
  func.func @_ca_single_chunk_kernel(%arg0: i32, %arg1: memref<2x32x256xf32, #tpu.memory_space<vmem>>, %arg2: memref<32x128xf32, #tpu.memory_space<vmem>>, %arg3: memref<128x32xf32, #tpu.memory_space<vmem>>, %arg4: memref<2x32xf32, #tpu.memory_space<vmem>>) attributes {dimension_semantics = [#tpu.dimension_semantics<parallel>], iteration_bounds = array<i64: 1>, scalar_prefetch = 0 : i64, scratch_operands = 0 : i64, tpu.core_type = #tpu.core_type<tc>, window_params = [{transform_indices = @transform_0, window_bounds = array<i64: 2, 32, 256>}, {pipeline_mode = #tpu.pipeline_mode<synchronous>, transform_indices = @transform_1, window_bounds = array<i64: 32, 128>}, {pipeline_mode = #tpu.pipeline_mode<synchronous>, transform_indices = @transform_2, window_bounds = array<i64: 128, 32>}, {transform_indices = @transform_3, window_bounds = array<i64: 2, 32>}]} {
    %c0 = arith.constant 0 : index
    %c0_0 = arith.constant 0 : index
    %c0_1 = arith.constant 0 : index
    %0 = vector.load %arg1[%c0, %c0_0, %c0_1] : memref<2x32x256xf32, #tpu.memory_space<vmem>>, vector<2x32x256xf32>
    %cst = arith.constant dense<0.000000e+00> : vector<2x32xf32>
    %1 = vector.multi_reduction <add>, %0, %cst [2] : vector<2x32x256xf32> to vector<2x32xf32>
    %cst_2 = arith.constant dense<0xFF800000> : vector<2x32xf32>
    %2 = vector.multi_reduction <maximumf>, %0, %cst_2 [2] : vector<2x32x256xf32> to vector<2x32xf32>
    %cst_3 = arith.constant 3.906250e-03 : f32
    %3 = vector.broadcast %cst_3 : f32 to vector<2x32xf32>
    %4 = arith.mulf %1, %3 : vector<2x32xf32>
    %5 = tpu.concatenate %4, %2 in 0 : vector<2x32xf32>, vector<2x32xf32> -> vector<4x32xf32>
    %c0_4 = arith.constant 0 : index
    %c0_5 = arith.constant 0 : index
    %6 = vector.load %arg2[%c0_4, %c0_5] : memref<32x128xf32, #tpu.memory_space<vmem>>, vector<32x128xf32>
    %cst_6 = arith.constant dense<0.000000e+00> : vector<4x128xf32>
    %7 = tpu.matmul %5, %6, %cst_6 {dimension_numbers = #tpu.dot_dimension_numbers<[1], [0], [0], [1], [0, 0, 1, 1], [], []>} : vector<4x32xf32>, vector<32x128xf32>, vector<4x128xf32> -> vector<4x128xf32>
    %cst_7 = arith.constant 0.000000e+00 : f32
    %8 = vector.broadcast %cst_7 : f32 to vector<4x128xf32>
    %9 = arith.maximumf %7, %8 : vector<4x128xf32>
    %c0_8 = arith.constant 0 : index
    %c0_9 = arith.constant 0 : index
    %10 = vector.load %arg3[%c0_8, %c0_9] : memref<128x32xf32, #tpu.memory_space<vmem>>, vector<128x32xf32>
    %cst_10 = arith.constant dense<0.000000e+00> : vector<4x32xf32>
    %11 = tpu.matmul %9, %10, %cst_10 {dimension_numbers = #tpu.dot_dimension_numbers<[1], [0], [0], [1], [0, 0, 1, 1], [], []>} : vector<4x128xf32>, vector<128x32xf32>, vector<4x32xf32> -> vector<4x32xf32>
    %12 = vector.extract_strided_slice %11 {offsets = [0, 0], sizes = [2, 32], strides = [1, 1]} : vector<4x32xf32> to vector<2x32xf32>
    %13 = vector.extract_strided_slice %11 {offsets = [2, 0], sizes = [2, 32], strides = [1, 1]} : vector<4x32xf32> to vector<2x32xf32>
    %14 = arith.addf %12, %13 : vector<2x32xf32>
    %15 = arith.negf %14 : vector<2x32xf32>
    %16 = math.exp %15 : vector<2x32xf32>
    %cst_11 = arith.constant 1.000000e+00 : f32
    %17 = vector.broadcast %cst_11 : f32 to vector<2x32xf32>
    %18 = arith.addf %17, %16 : vector<2x32xf32>
    %19 = arith.divf %17, %18 : vector<2x32xf32>
    %c0_12 = arith.constant 0 : index
    %c0_13 = arith.constant 0 : index
    %20 = vector.load %arg4[%c0_12, %c0_13] : memref<2x32xf32, #tpu.memory_space<vmem>>, vector<2x32xf32>
    tpu.vector_store %arg4[%c0_12, %c0_13], %19 {strides = array<i32>} : memref<2x32xf32, #tpu.memory_space<vmem>>, vector<2x32xf32>,
    return
  }
  func.func @transform_0(%arg0: i32) -> (i32, i32, i32) {
    %c0_i32 = arith.constant 0 : i32
    %c0_i32_0 = arith.constant 0 : i32
    %c0_i32_1 = arith.constant 0 : i32
    return %arg0, %c0_i32, %c0_i32_0 : i32, i32, i32
  }
  func.func @transform_1(%arg0: i32) -> (i32, i32) {
    %c0_i32 = arith.constant 0 : i32
    %c0_i32_0 = arith.constant 0 : i32
    %c0_i32_1 = arith.constant 0 : i32
    return %c0_i32, %c0_i32_0 : i32, i32
  }
  func.func @transform_2(%arg0: i32) -> (i32, i32) {
    %c0_i32 = arith.constant 0 : i32
    %c0_i32_0 = arith.constant 0 : i32
    %c0_i32_1 = arith.constant 0 : i32
    return %c0_i32, %c0_i32_0 : i32, i32
  }
  func.func @transform_3(%arg0: i32) -> (i32, i32) {
    %c0_i32 = arith.constant 0 : i32
    %c0_i32_0 = arith.constant 0 : i32
    return %arg0, %c0_i32 : i32, i32
  }
}

</mosaic_0001>

<bundles_post_ra>
// kernel: channel_attention.1
= control target key start
LH: loop header
LB: loop body
LE: loop exit
PB: predicated region body
PF: predicated region fallthrough
CT: control target
= control target key end

     0   :  { %s676_s0 = inlined_call_operand.vmem [shape: f32[2,32,256], index: 0, kind: input, shape index: {}]   ;;  %s677_s1 = inlined_call_operand.vmem [shape: f32[32,128], index: 1, kind: input, shape index: {}]   ;;  %s678_s2 = inlined_call_operand.vmem [shape: f32[128,32], index: 2, kind: input, shape index: {}]   ;;  %s679_s3 = inlined_call_operand.hbm [shape: f32[2,32], index: 3, kind: output, shape index: {}]  }
   0x1   :  { %v23_v0 = vld [vmem:[%s676_s0 + $0x40] sm:$0xff]  ;;  %v24_v1 = vld [vmem:[%s676_s0 + $0x48] sm:$0xff]  ;;  %v25_v5 = vld [vmem:[%s676_s0 + $0x50] sm:$0xff] }
   0x2   :  { %v15_v2 = vld [vmem:[%s676_s0] sm:$0xff]  ;;  %v43_v3 = vadd.f32 %v24_v1, %v23_v0  ;;  %v16_v4 = vld [vmem:[%s676_s0 + $0x8] sm:$0xff]  ;;  %v26_v6 = vld [vmem:[%s676_s0 + $0x58] sm:$0xff] }
   0x3   :  { %v31_v7 = vadd.f32 %v16_v4, %v15_v2  ;;  %v17_v8 = vld [vmem:[%s676_s0 + $0x10] sm:$0xff]  ;;  %v18_v9 = vld [vmem:[%s676_s0 + $0x18] sm:$0xff]  ;;  %v46_v10 = vadd.f32 %v26_v6, %v25_v5  ;;  %v27_v12 = vld [vmem:[%s676_s0 + $0x60] sm:$0xff] }
   0x4   :  { %44 = vadd.xlane.f32.xlu1 %v43_v3  ;;  %v34_v11 = vadd.f32 %v18_v9, %v17_v8  ;;  %v28_v13 = vld [vmem:[%s676_s0 + $0x68] sm:$0xff]  ;;  %v19_v14 = vld [vmem:[%s676_s0 + $0x20] sm:$0xff] }
   0x5   :  { %32 = vadd.xlane.f32.xlu0 %v31_v7  ;;  %v20_v15 = vld [vmem:[%s676_s0 + $0x28] sm:$0xff] }
   0x6   :  { %8 = vsyncpa [#allocation3], 0  ;;  %v49_v16 = vadd.f32 %v28_v13, %v27_v12  ;;  %v37_v17 = vadd.f32 %v20_v15, %v19_v14  ;;  %v29_v18 = vld [vmem:[%s676_s0 + $0x70] sm:$0xff]  ;;  %v30_v19 = vld [vmem:[%s676_s0 + $0x78] sm:$0xff]  ;;  %v58_v24 = vmax.f32 %v17_v8, %v18_v9  ;;  %v55_v25 = vmax.f32 %v15_v2, %v16_v4  ;;  %s521_s27 = smov [#allocation2]  }
   0x7   :  { %v21_v20 = vld [vmem:[%s676_s0 + $0x30] sm:$0xff]  ;;  %v22_v21 = vld [vmem:[%s676_s0 + $0x38] sm:$0xff]  ;;  %v52_v22 = vadd.f32 %v30_v19, %v29_v18  ;;  %v70_v26 = vmax.f32 %v25_v5, %v26_v6  ;;  %v67_v27 = vmax.f32 %v23_v0, %v24_v1  ;;  %v73_v28 = vmax.f32 %v27_v12, %v28_v13  ;;  %v195_v32 = vld [vmem:[%s677_s1] sm:$0xff]  ;;  %s378_s28 = sshll.u32 %s521_s27, 4  ;;  %s379_s28 = int_to_ptr.vmem [resolvable:$true] %s378_s28 }
   0x8   :  { %47 = vadd.xlane.f32.xlu1 %v46_v10  ;;  %v40_v23 = vadd.f32 %v22_v21, %v21_v20  ;;  %v61_v29 = vmax.f32 %v19_v14, %v20_v15  ;;  %v76_v30 = vmax.f32 %v29_v18, %v30_v19  ;;  %v64_v31 = vmax.f32 %v21_v20, %v22_v21  ;;  %v196_v33 = vld [vmem:[%s677_s1 + $0x8] sm:$0xff]  ;;  %v197_v36 = vld [vmem:[%s677_s1 + $0x10] sm:$0xff]  ;;  %v198_v37 = vld [vmem:[%s677_s1 + $0x18] sm:$0xff]  ;;  %p499_p1 = scmp.lt.s32.totalorder %s379_s28, %s379_s28 }
   0x9   :  { %35 = vadd.xlane.f32.xlu0 %v34_v11  ;;  %v457_v34 = vpack.c.bf16 %v196_v33, %v195_v32  ;;  %v518_v35 = vmov 0.0|0.0   ;;  %v460_v38 = vpack.c.bf16 %v198_v37, %v197_v36  ;;  %vm519_vm0 = vmmov 0   ;;  %v274_v40 = vld [vmem:[%s678_s2] sm:$0xff]  ;;  %v275_v41 = vld [vmem:[%s678_s2 + $0x8] sm:$0xff]  ;;  %v276_v42 = vld [vmem:[%s678_s2 + $0x10] sm:$0xff] }
   0xa   :  { %456 = vmatprep.subr.bf16.mxu0 %v518_v35  ;;  %462 = vmatprep.subr.bf16.mxu1 %v518_v35  ;;  %v520_v39 = vmov 0.0   ;;  %v463_v43 = vpack.c.bf16 %v275_v41, %v274_v40  ;;  %v277_v44 = vld [vmem:[%s678_s2 + $0x18] sm:$0xff]  ;;  %v278_v46 = vld [vmem:[%s678_s2 + $0x20] sm:$0xff]  ;;  %v279_v47 = vld [vmem:[%s678_s2 + $0x28] sm:$0xff]  ;;  %v95_v2 = vlaneseq  ;;  %vm106_vm1 = vcmask 130112  }
   0xb   :  { %458 = vmatpush3.bf16.msra.mxu0 %v457_v34  ;;  %418 = vmatprep.mubr.msk.f32.mxu0 %vm519_vm0, %v520_v39  ;;  %v466_v45 = vpack.c.bf16 %v277_v44, %v276_v42  ;;  %v469_v48 = vpack.c.bf16 %v279_v47, %v278_v46  ;;  %v280_v49 = vld [vmem:[%s678_s2 + $0x30] sm:$0xff]  ;;  %v281_v50 = vld [vmem:[%s678_s2 + $0x38] sm:$0xff]  ;;  %v282_v52 = vld [vmem:[%s678_s2 + $0x40] sm:$0xff]  ;;  %vm113_vm2 = vcmask 195712   ;;  %vm120_vm3 = vcmask 261312  }
   0xc   :  { %50 = vadd.xlane.f32.xlu1 %v49_v16  ;;  %459 = vmatprep.subr.bf16.mxu0 %v518_v35  ;;  %v472_v51 = vpack.c.bf16 %v281_v50, %v280_v49  ;;  %v283_v53 = vld [vmem:[%s678_s2 + $0x48] sm:$0xff]  ;;  %v284_v55 = vld [vmem:[%s678_s2 + $0x50] sm:$0xff]  ;;  %v285_v56 = vld [vmem:[%s678_s2 + $0x58] sm:$0xff]  ;;  %v96_v5 = vand.u32 127, %v95_v2  ;;  %v98_v7 = vshrl.u32 %v95_v2, 7  ;;  %vm141_vm4 = vcmask 1041409  }
   0xd   :  { %38 = vadd.xlane.f32.xlu0 %v37_v17  ;;  %453 = vmatprep.mubr.msk.f32.mxu1 %vm519_vm0, %v520_v39  ;;  %v475_v54 = vpack.c.bf16 %v283_v53, %v282_v52  ;;  %v478_v57 = vpack.c.bf16 %v285_v56, %v284_v55  ;;  %v286_v58 = vld [vmem:[%s678_s2 + $0x60] sm:$0xff]  ;;  %v287_v59 = vld [vmem:[%s678_s2 + $0x68] sm:$0xff]  ;;  %vm190_vm5 = vcmask 1043459   ;;  %vm193_vm6 = vcmask 1041408  }
   0xe   :  { %464 = vmatpush3.bf16.msra.mxu1 %v463_v43  ;;  %v481_v60 = vpack.c.bf16 %v287_v59, %v286_v58  ;;  %v101_v8 = vadd.s32 4294967288, %v96_v5  ;;  %v108_v9 = vadd.s32 4294967280, %v96_v5  ;;  %v115_v11 = vadd.s32 4294967272, %v96_v5 }
   0xf   :  { %461 = vmatpush3.bf16.msra.mxu0 %v460_v38  ;;  %465 = vmatprep.subr.bf16.mxu1 %v518_v35  ;;  %v99_v13 = vsub.s32 %v96_v5, %v98_v7  ;;  %vm199_vm7 = vcmask 261120   ;;  %vm370_vm8 = vcmask 254976  }
  0x10   :  { %53 = vadd.xlane.f32.xlu1 %v52_v22  ;;  %v104_v14 = vsub.s32 %v101_v8, %v98_v7  ;;  %v111_v16 = vsub.s32 %v108_v9, %v98_v7 }
  0x11   :  { %41 = vadd.xlane.f32.xlu0 %v40_v23  ;;  %v118_v23 = vsub.s32 %v115_v11, %v98_v7 }
  0x12   :  { %467 = vmatpush3.bf16.msra.mxu1 %v466_v45 }
  0x13   :  { %468 = vmatprep.subr.bf16.mxu1 %v518_v35 }
  0x14   :  { %59 = vmax.xlane.f32.xlu1 %v58_v24 }
  0x15   :  { %56 = vmax.xlane.f32.xlu0 %v55_v25 }
  0x16   :  { %470 = vmatpush3.bf16.msra.mxu1 %v469_v48 }
  0x17   :  { %471 = vmatprep.subr.bf16.mxu1 %v518_v35 }
  0x18   :  { %71 = vmax.xlane.f32.xlu1 %v70_v26 }
  0x19   :  { %68 = vmax.xlane.f32.xlu0 %v67_v27 }
  0x1a   :  { %473 = vmatpush3.bf16.msra.mxu1 %v472_v51 }
  0x1b   :  { %474 = vmatprep.subr.bf16.mxu1 %v518_v35 }
  0x1c   :  { %74 = vmax.xlane.f32.xlu1 %v73_v28 }
  0x1d   :  { %62 = vmax.xlane.f32.xlu0 %v61_v29 }
  0x1e   :  { %476 = vmatpush3.bf16.msra.mxu1 %v475_v54 }
  0x1f   :  { %477 = vmatprep.subr.bf16.mxu1 %v518_v35 }
  0x20   :  { %77 = vmax.xlane.f32.xlu1 %v76_v30 }
  0x21   :  { %65 = vmax.xlane.f32.xlu0 %v64_v31 }
  0x22   :  { %479 = vmatpush3.bf16.msra.mxu1 %v478_v57 }
  0x23   :  { %480 = vmatprep.subr.bf16.mxu1 %v518_v35 }
  0x26   :  { %482 = vmatpush3.bf16.msra.mxu1 %v481_v60 }
  0x27   :  { %483 = vmatprep.subr.bf16.mxu1 %v518_v35 }
  0x91   :  { %v45_v61 = vpop.xlane.xlu1 %44 }
  0x92   :  { %v33_v62 = vpop.xlane.xlu0 %32  ;;  %v83_v17 = vmul.f32 0.00390625, %v45_v61 }
  0x93   :  { %v79_v18 = vmul.f32 0.00390625, %v33_v62  ;;  %v288_v62 = vld [vmem:[%s678_s2 + $0x70] sm:$0xff] }
  0x94   :  { %v125_v28 = vrot.slane %v83_v17, %v99_v13 }
  0x95   :  { %v48_v63 = vpop.xlane.xlu1 %47  ;;  %v100_v29 = vrot.slane %v79_v18, %v99_v13 }
  0x96   :  { %v36_v0 = vpop.xlane.xlu0 %35  ;;  %v84_v15 = vmul.f32 0.00390625, %v48_v63  ;;  %v289_v63 = vld [vmem:[%s678_s2 + $0x78] sm:$0xff]  ;;  %s494_s2 = scalar_lea.vmem %s379_s28, 32 }
  0x97   :  { %v80_v19 = vmul.f32 0.00390625, %v36_v0  ;;  %v484_v0 = vpack.c.bf16 %v289_v63, %v288_v62  ;;  %p495_p0 = scmp.ne.s32.totalorder %s379_s28, %s494_s2  ;;  %p500_p2 = scmp.lt.s32.totalorder %s494_s2, %s494_s2 }
  0x98   :  { %v129_v27 = vrot.slane %v84_v15, %v104_v14 }
  0x99   :  { %v51_v1 = vpop.xlane.xlu1 %50  ;;  %v105_v30 = vrot.slane %v80_v19, %v104_v14  ;;  %485 = vmatpush3.bf16.msra.mxu1 %v484_v0  ;;  %p501_p3 = por %p500_p2, %p499_p1 }
  0x9a   :  { %v39_v3 = vpop.xlane.xlu0 %38  ;;  %v85_v20 = vmul.f32 0.00390625, %v51_v1  ;;  %v130_v42 = vsel %vm106_vm1, %v129_v27, %v125_v28 }
  0x9b   :  { %v81_v22 = vmul.f32 0.00390625, %v39_v3  ;;  %v107_v44 = vsel %vm106_vm1, %v105_v30, %v100_v29  ;;  %p502_p4 = pnand %p501_p3, %p495_p0 }
  0x9c   :  { %v134_v31 = vrot.slane %v85_v20, %v111_v16 }
  0x9d   :  { %v54_v4 = vpop.xlane.xlu1 %53  ;;  %v112_v33 = vrot.slane %v81_v22, %v111_v16 }
  0x9e   :  { %v42_v6 = vpop.xlane.xlu0 %41  ;;  %v86_v24 = vmul.f32 0.00390625, %v54_v4  ;;  %v135_v45 = vsel %vm113_vm2, %v134_v31, %v130_v42 }
  0x9f   :  { %v82_v26 = vmul.f32 0.00390625, %v42_v6  ;;  %v114_v47 = vsel %vm113_vm2, %v112_v33, %v107_v44 }
  0xa0   :  { %v139_v34 = vrot.slane %v86_v24, %v118_v23 }
  0xa1   :  { %v60_v10 = vpop.xlane.xlu1 %59  ;;  %v119_v38 = vrot.slane %v82_v26, %v118_v23 }
  0xa2   :  { %v57_v12 = vpop.xlane.xlu0 %56  ;;  %v159_v39 = vrot.slane %v60_v10, %v104_v14  ;;  %v140_v48 = vsel %vm120_vm3, %v139_v34, %v135_v45 }
  0xa3   :  { %v155_v40 = vrot.slane %v57_v12, %v99_v13  ;;  %v121_v52 = vsel %vm120_vm3, %v119_v38, %v114_v47 }
  0xa4   :  { %v142_v59 = vsel %vm141_vm4, %v140_v48, %v121_v52 }
  0xa5   :  { %v72_v21 = vpop.xlane.xlu1 %71  ;;  %v160_v53 = vsel %vm106_vm1, %v159_v39, %v155_v40 }
  0xa6   :  { %v69_v25 = vpop.xlane.xlu0 %68  ;;  %v178_v35 = vrot.slane %v72_v21, %v104_v14 }
  0xa7   :  { %v174_v36 = vrot.slane %v69_v25, %v99_v13 }
  0xa9   :  { %v75_v32 = vpop.xlane.xlu1 %74  ;;  %v179_v49 = vsel %vm106_vm1, %v178_v35, %v174_v36 }
  0xaa   :  { %v63_v37 = vpop.xlane.xlu0 %62  ;;  %v183_v41 = vrot.slane %v75_v32, %v111_v16 }
  0xab   :  { %v164_v43 = vrot.slane %v63_v37, %v111_v16 }
  0xac   :  { %v184_v54 = vsel %vm113_vm2, %v183_v41, %v179_v49 }
  0xad   :  { %v78_v46 = vpop.xlane.xlu1 %77  ;;  %v165_v56 = vsel %vm113_vm2, %v164_v43, %v160_v53 }
  0xae   :  { %v188_v50 = vrot.slane %v78_v46, %v118_v23  ;;  %v66_v51 = vpop.xlane.xlu0 %65 }
  0xaf   :  { %v169_v55 = vrot.slane %v66_v51, %v118_v23 }
  0xb0   :  { %v189_v57 = vsel %vm120_vm3, %v188_v50, %v184_v54 }
  0xb1   :  { %v170_v58 = vsel %vm120_vm3, %v169_v55, %v165_v56 }
  0xb2   :  { %v191_v60 = vsel %vm190_vm5, %v189_v57, %v170_v58 }
  0xb3   :  { %v194_v61 = vsel %vm193_vm6, %v142_v59, %v191_v60 }
  0xb4   :  { %419 = vmatmul.mubr.msk.f32.vlgmr.msra.gmra.mrb[0].mxu0 %vm199_vm7, %v194_v61 }
 0x187   :  { %v269_v1 = vpop.f32.mrb[0].mxu0 }
 0x188   :  { %v273_v2 = vmax.f32 %v269_v1, 0.0  ;;  %v420_v3 = vpop.f32.mrb[1].mxu0 }
 0x18a   :  { %454 = vmatmul.mubr.f32.vlgmr.msra.gmra.mrb[0].mxu1 %v273_v2 }
 0x25d   :  { %v356_v4 = vpop.f32.mrb[0].mxu1 }
 0x25e   :  { %v361_v5 = vrot.slane %v356_v4, 2  ;;  %v455_v6 = vpop.f32.mrb[1].mxu1 }
 0x260   :  { %v363_v7 = vadd.f32 %v361_v5, %v356_v4 }
 0x262   :  { %v387_v8 = vmul.f32 -1.442695, %v363_v7 }
 0x264   :  { %490 = vpow2.f32 %v387_v8 }
 0x26e   :  { %v491_v9 = vpop.eup %490 }
 0x26f   :  { %v367_v10 = vadd.f32 1.0, %v491_v9 }
 0x271   :  { %492 = vrcp.f32 %v367_v10 }
 0x27b   :  { %v493_v11 = vpop.eup %492 }
 0x27c   :  { %371 = vst.msk [vmem:[#allocation2] sm:$0x3] %vm370_vm8, %v493_v11 }
 0x27d   :  { %505 = shalt.err (!%p502_p4)
}
 0x27e   :  { %s506_s30 = scalar_lea.hbm %s679_s3, 32 }
 0x27f   :  { %p507_p5 = scmp.ne.s32.totalorder %s679_s3, %s506_s30  ;;  %p510_p6 = scmp.lt.u32.totalorder %s506_s30, %s679_s3 }
 0x281   :  { %p512_p7 = pnand %p510_p6, %p507_p5 }
 0x283   :  { %515 = shalt.err (!%p512_p7)
}
 0x284   :  { %381 = dma.vmem_to_hbm [thread:$0]  %s379_s28, 32, %s679_s3, [#allocation3]  }
 0x285   :  { %516 = dma.done.wait [#allocation3], 32  }
 0x286   :  { %517 = vsyncadd [#allocation3], 4294967264 }
 0x287   :  { %385 = vsyncpa [#allocation3], 1 }

</bundles_post_ra>
